<compile_context>
chip_gen: v6e
topology: v6e:2x2x1
jax: 0.10.0
libtpu: 0.0.40
codegen_flags: <defaults>
</compile_context>

<pallas_src>
import jax
import jax.numpy as jnp
from jax.experimental import pallas as pl
from jax.experimental.pallas import tpu as pltpu


def attention_kernel(x_ref, w1_ref, b1_ref, w2_ref, b2_ref, o_ref):
    # x_ref : (TB, S, D) f32      w1_ref: (D, D) bf16     b1_ref: (1, D) f32
    # w2_ref: (1, D)  f32         b2_ref: (1, 1) f32 (SMEM scalar)
    # o_ref : (TB, D) f32
    x = x_ref[...]                         # (TB, S, D) f32
    tb, s, d = x.shape

    # --- Linear(D, D) + Tanh: one big (TB*S, D) @ (D, D) MXU matmul,
    #     bf16 operands, f32 accumulation; activation math in f32.
    x2 = x.reshape(tb * s, d)
    h = jnp.tanh(
        jnp.dot(
            x2.astype(jnp.bfloat16),
            w1_ref[...],
            preferred_element_type=jnp.float32,
        )
        + b1_ref[...]
    )                                      # (TB*S, D) f32

    # --- Linear(D, 1) as VPU multiply + lane reduce (avoids N=1 MXU matmul).
    h3 = h.reshape(tb, s, d)
    scores = jnp.sum(h3 * w2_ref[...], axis=-1) + b2_ref[0, 0]   # (TB, S) f32

    # Dropout(0.5) is identity in eval/inference mode.
    # TODO(synk): training-mode dropout (stochastic masking of scores) not implemented.

    # --- Softmax over the sequence axis (lane axis here).
    m = jnp.max(scores, axis=-1, keepdims=True)                  # (TB, 1)
    e = jnp.exp(scores - m)                                      # (TB, S)
    denom = jnp.sum(e, axis=-1, keepdims=True)                   # (TB, 1)
    p = e * pl.reciprocal(denom, approx=True)                    # (TB, S)

    # --- Weighted sum over S as a batched MXU matmul -> lane-dense (TB, D).
    out = jnp.einsum(
        "bqs,bsd->bqd", p[:, None, :], x, preferred_element_type=jnp.float32
    )                                                            # (TB, 1, D)
    o_ref[...] = out.reshape(tb, d)


def attention_forward(x, w1, b1, w2, b2, *, tb=None):
    B, S, D = x.shape
    if tb is None:
        tb = 8 if B % 8 == 0 else B        # multiple of 8 when possible
    assert B % tb == 0, "batch must be divisible by the batch tile"

    # Lay parameters out for the kernel.
    w1_bf16 = w1.astype(jnp.bfloat16)                  # bf16 MXU operand (halves HBM traffic)
    b1_row = b1.reshape(1, D).astype(jnp.float32)      # (1, D)
    w2_row = w2.reshape(1, D).astype(jnp.float32)      # Linear(D,1) weight as lane-dense row
    b2_s = b2.reshape(1, 1).astype(jnp.float32)        # SMEM scalar

    grid_spec = pltpu.PrefetchScalarGridSpec(
        num_scalar_prefetch=0,
        grid=(B // tb,),
        in_specs=[
            pl.BlockSpec((tb, S, D), lambda b: (b, 0, 0)),               # x batch tile
            pl.BlockSpec((D, D), lambda b: (0, 0)),                      # W1 (bf16, resident)
            pl.BlockSpec((1, D), lambda b: (0, 0)),                      # b1
            pl.BlockSpec((1, D), lambda b: (0, 0)),                      # w2 row
            pl.BlockSpec(memory_space=pltpu.MemorySpace.SMEM),           # b2 scalar
        ],
        out_specs=pl.BlockSpec((tb, D), lambda b: (b, 0)),               # (B, D) direct
    )
    return pl.pallas_call(
        attention_kernel,
        out_shape=jax.ShapeDtypeStruct((B, D), jnp.float32),
        grid_spec=grid_spec,
        compiler_params=pltpu.CompilerParams(
            dimension_semantics=("parallel",),          # batch tiles shard across TCs (v7x)
            vmem_limit_bytes=64 * 1024 * 1024,          # allow larger tiles than default scope
        ),
    )(x, w1_bf16, b1_row, w2_row, b2_s)


def attention_reference(x, w1, b1, w2, b2):
    # Pure-JAX f32 reference (PyTorch eval-mode semantics).
    h = jnp.tanh(jnp.einsum("bsd,de->bse", x, w1) + b1.reshape(1, 1, -1))
    scores = jnp.einsum("bsd,do->bso", h, w2) + b2.reshape(1, 1, 1)
    p = jax.nn.softmax(scores, axis=1)
    return jnp.sum(x * p, axis=1)


if __name__ == "__main__":
    # Small but lane/sublane-aligned shapes: D multiple of 128, TB = 8.
    B, S, D = 16, 8, 128

    key = jax.random.PRNGKey(0)
    kx, kw1, kb1, kw2, kb2 = jax.random.split(key, 5)

    x = jax.random.normal(kx, (B, S, D), dtype=jnp.float32)

    # PyTorch-Linear-style uniform +-1/sqrt(fan_in) init.
    bound = 1.0 / (D ** 0.5)
    w1 = jax.random.uniform(kw1, (D, D), jnp.float32, -bound, bound)
    b1 = jax.random.uniform(kb1, (1, D), jnp.float32, -bound, bound)
    w2 = jax.random.uniform(kw2, (D, 1), jnp.float32, -bound, bound)
    b2 = jax.random.uniform(kb2, (1, 1), jnp.float32, -bound, bound)

    out = attention_forward(x, w1, b1, w2, b2)
    out = jax.block_until_ready(out)

    ref = attention_reference(x, w1, b1, w2, b2)
    assert out.shape == (B, D)
    # bf16 first matmul + approx reciprocal => small numerical deviation vs f32 ref.
    assert jnp.allclose(out, ref, atol=2e-2, rtol=2e-2), "mismatch vs reference"

    print("KERNEL_OK")
</pallas_src>

<mosaic_0001>
module attributes {stable_mosaic.version = 11 : i64} {
  func.func @attention_kernel(%arg0: i32, %arg1: memref<8x8x128xf32, #tpu.memory_space<vmem>>, %arg2: memref<128x128xbf16, #tpu.memory_space<vmem>>, %arg3: memref<1x128xf32, #tpu.memory_space<vmem>>, %arg4: memref<1x128xf32, #tpu.memory_space<vmem>>, %arg5: memref<1x1xf32, #tpu.memory_space<smem>>, %arg6: memref<8x128xf32, #tpu.memory_space<vmem>>) attributes {dimension_semantics = [#tpu.dimension_semantics<parallel>], iteration_bounds = array<i64: 2>, scalar_prefetch = 0 : i64, scratch_operands = 0 : i64, tpu.core_type = #tpu.core_type<tc>, window_params = [{transform_indices = @transform_0, window_bounds = array<i64: 8, 8, 128>}, {pipeline_mode = #tpu.pipeline_mode<synchronous>, transform_indices = @transform_1, window_bounds = array<i64: 128, 128>}, {pipeline_mode = #tpu.pipeline_mode<synchronous>, transform_indices = @transform_2, window_bounds = array<i64: 1, 128>}, {pipeline_mode = #tpu.pipeline_mode<synchronous>, transform_indices = @transform_3, window_bounds = array<i64: 1, 128>}, {transform_indices = @transform_4, window_bounds = array<i64: 1, 1>}, {transform_indices = @transform_5, window_bounds = array<i64: 8, 128>}]} {
    %c0 = arith.constant 0 : index
    %c0_0 = arith.constant 0 : index
    %c0_1 = arith.constant 0 : index
    %0 = vector.load %arg1[%c0, %c0_0, %c0_1] : memref<8x8x128xf32, #tpu.memory_space<vmem>>, vector<8x8x128xf32>
    %1 = vector.shape_cast %0 : vector<8x8x128xf32> to vector<64x128xf32>
    %2 = arith.truncf %1 : vector<64x128xf32> to vector<64x128xbf16>
    %c0_2 = arith.constant 0 : index
    %c0_3 = arith.constant 0 : index
    %3 = vector.load %arg2[%c0_2, %c0_3] : memref<128x128xbf16, #tpu.memory_space<vmem>>, vector<128x128xbf16>
    %cst = arith.constant dense<0.000000e+00> : vector<64x128xf32>
    %4 = tpu.matmul %2, %3, %cst {dimension_numbers = #tpu.dot_dimension_numbers<[1], [0], [0], [1], [0, 0, 1, 1], [], []>} : vector<64x128xbf16>, vector<128x128xbf16>, vector<64x128xf32> -> vector<64x128xf32>
    %c0_4 = arith.constant 0 : index
    %c0_5 = arith.constant 0 : index
    %5 = vector.load %arg3[%c0_4, %c0_5] : memref<1x128xf32, #tpu.memory_space<vmem>>, vector<1x128xf32>
    %6 = vector.broadcast %5 : vector<1x128xf32> to vector<64x128xf32>
    %7 = arith.addf %4, %6 : vector<64x128xf32>
    %8 = math.tanh %7 : vector<64x128xf32>
    %9 = vector.shape_cast %8 : vector<64x128xf32> to vector<8x8x128xf32>
    %c0_6 = arith.constant 0 : index
    %c0_7 = arith.constant 0 : index
    %10 = vector.load %arg4[%c0_6, %c0_7] : memref<1x128xf32, #tpu.memory_space<vmem>>, vector<1x128xf32>
    %11 = vector.shape_cast %10 : vector<1x128xf32> to vector<1x1x128xf32>
    %12 = vector.broadcast %11 : vector<1x1x128xf32> to vector<8x8x128xf32>
    %13 = arith.mulf %9, %12 : vector<8x8x128xf32>
    %cst_8 = arith.constant dense<0.000000e+00> : vector<8x8xf32>
    %14 = vector.multi_reduction <add>, %13, %cst_8 [2] : vector<8x8x128xf32> to vector<8x8xf32>
    %c0_9 = arith.constant 0 : index
    %c0_10 = arith.constant 0 : index
    %15 = memref.load %arg5[%c0_9, %c0_10] : memref<1x1xf32, #tpu.memory_space<smem>>
    %16 = vector.broadcast %15 : f32 to vector<8x8xf32>
    %17 = arith.addf %14, %16 : vector<8x8xf32>
    %cst_11 = arith.constant dense<0xFF800000> : vector<8xf32>
    %18 = vector.multi_reduction <maximumf>, %17, %cst_11 [1] : vector<8x8xf32> to vector<8xf32>
    %19 = vector.shape_cast %18 : vector<8xf32> to vector<8x1xf32>
    %20 = vector.broadcast %19 : vector<8x1xf32> to vector<8x8xf32>
    %21 = arith.subf %17, %20 : vector<8x8xf32>
    %22 = math.exp %21 : vector<8x8xf32>
    %cst_12 = arith.constant dense<0.000000e+00> : vector<8xf32>
    %23 = vector.multi_reduction <add>, %22, %cst_12 [1] : vector<8x8xf32> to vector<8xf32>
    %24 = vector.shape_cast %23 : vector<8xf32> to vector<8x1xf32>
    %25 = tpu.reciprocal %24 {approx = true} : vector<8x1xf32> -> vector<8x1xf32>
    %26 = vector.broadcast %25 : vector<8x1xf32> to vector<8x8xf32>
    %27 = arith.mulf %22, %26 : vector<8x8xf32>
    %28 = vector.shape_cast %27 : vector<8x8xf32> to vector<8x1x8xf32>
    "tpu.trace_start"() <{level = 10 : i32, message = "bqs,bsd->bqd"}> : () -> ()
    %cst_13 = arith.constant dense<0.000000e+00> : vector<8x1x128xf32>
    %29 = tpu.matmul %28, %0, %cst_13 {dimension_numbers = #tpu.dot_dimension_numbers<[2], [1], [1], [2], [0, 0, 0, 1, 1, 2], [0], [0]>} : vector<8x1x8xf32>, vector<8x8x128xf32>, vector<8x1x128xf32> -> vector<8x1x128xf32>
    "tpu.trace_stop"() : () -> ()
    %30 = vector.shape_cast %29 : vector<8x1x128xf32> to vector<8x128xf32>
    %c0_14 = arith.constant 0 : index
    %c0_15 = arith.constant 0 : index
    %31 = vector.load %arg6[%c0_14, %c0_15] : memref<8x128xf32, #tpu.memory_space<vmem>>, vector<8x128xf32>
    tpu.vector_store %arg6[%c0_14, %c0_15], %30 {strides = array<i32>} : memref<8x128xf32, #tpu.memory_space<vmem>>, vector<8x128xf32>,
    return
  }
  func.func @transform_0(%arg0: i32) -> (i32, i32, i32) {
    %c0_i32 = arith.constant 0 : i32
    %c0_i32_0 = arith.constant 0 : i32
    %c0_i32_1 = arith.constant 0 : i32
    return %arg0, %c0_i32, %c0_i32_0 : i32, i32, i32
  }
  func.func @transform_1(%arg0: i32) -> (i32, i32) {
    %c0_i32 = arith.constant 0 : i32
    %c0_i32_0 = arith.constant 0 : i32
    %c0_i32_1 = arith.constant 0 : i32
    return %c0_i32, %c0_i32_0 : i32, i32
  }
  func.func @transform_2(%arg0: i32) -> (i32, i32) {
    %c0_i32 = arith.constant 0 : i32
    %c0_i32_0 = arith.constant 0 : i32
    %c0_i32_1 = arith.constant 0 : i32
    return %c0_i32, %c0_i32_0 : i32, i32
  }
  func.func @transform_3(%arg0: i32) -> (i32, i32) {
    %c0_i32 = arith.constant 0 : i32
    %c0_i32_0 = arith.constant 0 : i32
    %c0_i32_1 = arith.constant 0 : i32
    return %c0_i32, %c0_i32_0 : i32, i32
  }
  func.func @transform_4(%arg0: i32) -> (i32, i32) {
    %c0_i32 = arith.constant 0 : i32
    %c0_i32_0 = arith.constant 0 : i32
    %c0_i32_1 = arith.constant 0 : i32
    return %c0_i32, %c0_i32_0 : i32, i32
  }
  func.func @transform_5(%arg0: i32) -> (i32, i32) {
    %c0_i32 = arith.constant 0 : i32
    %c0_i32_0 = arith.constant 0 : i32
    return %arg0, %c0_i32 : i32, i32
  }
}

</mosaic_0001>

<bundles_post_ra>
// kernel: tpu_custom_call.1
= control target key start
LH: loop header
LB: loop body
LE: loop exit
PB: predicated region body
PF: predicated region fallthrough
CT: control target
= control target key end

     0   :  { %s2210_s0 = inlined_call_operand.hbm [shape: f32[16,8,128], index: 0, kind: input, shape index: {}]   ;;  %s2211_s1 = inlined_call_operand.hbm [shape: bf16[128,128], index: 1, kind: input, shape index: {}]   ;;  %s2212_s2 = inlined_call_operand.vmem [shape: f32[1,128], index: 2, kind: input, shape index: {}]   ;;  %s2213_s3 = inlined_call_operand.vmem [shape: f32[1,128], index: 3, kind: input, shape index: {}]   ;;  %s2214_s4 = inlined_call_operand.<no memory space> [shape: f32[1,1], index: 4, kind: input, shape index: {}]   ;;  %s2215_s5 = inlined_call_operand.hbm [shape: f32[16,128], index: 5, kind: output, shape index: {}]  }
   0x1   :  { %10 = sst [smem:[#allocation2]] %s2214_s4 }
   0x2   :  { %11 = vsyncpa [#allocation4], 0 }
   0x3   :  { %13 = vsyncpa [#allocation4 + $0x1], 0 }
   0x4   :  { %14 = vsyncpa [#allocation7], 0 }
   0x5   :  { %15 = vsyncpa [#allocation5], 0 }
   0x6   :  { %17 = vsyncpa [#allocation5 + $0x1], 0  ;;  %s1868_s20 = smov 0   ;;  %s1870_s21 = smov 0  }
   0x7   :  { %s1872_s22 = smov 0   ;;  %s1874_s23 = smov 0  }
   0x8 LB: > { %s1889_s4 = sadd.s32 4294967295, %s1823_s23   ;;  %s1467_s24 = sadd.s32 4294967294, %s1823_s23   ;;  %s1823_s23 = sphi %s1874_s23, %s2237_s23   ;;  %s1819_s22 = sphi %s1872_s22, %s2236_s22   ;;  %s1815_s21 = sphi %s1870_s21, %s2235_s21   ;;  %s1811_s20 = sphi %s1868_s20, %s2234_s20  }
   0x9   : > { %p43_p0 = scmp.ne.s32.totalorder %s1815_s21, %s1811_s20  ;;  %p2216_p1 = scmp.eq.s32.totalorder %s1889_s4, 0 }
   0xa   : > { %p157_p3 = scmp.eq.s32.totalorder %s1467_s24, 1  ;;  %p1468_p5 = scmp.ge.s32.totalorder %s1823_s23, 1 }
   0xb   : > { %p1898_p4 = por %p2216_p1, %p43_p0  ;;  %p164_p7 = scmp.lt.s32.totalorder %s1823_s23, 3 }
   0xc   : > { %p1903_p6 = por %p157_p3, %p43_p0  ;;  %s1825_s28 = smov [#allocation6]  }
   0xd   : > { %s2220_s25 = scalar_select %p1898_p4, 1, 0 }
   0xe   : > { %s2221_s26 = scalar_select %p1903_p6, 1, 0 }
   0xf   : > { %p1908_p8 = pnand %p1468_p5, %p164_p7  ;;  %s176_s29 = sshll.u32 %s1825_s28, 4  ;;  %s177_s29 = int_to_ptr.vmem [resolvable:$true] %s176_s29 }
  0x10   : > { %s1922_s6 = sadd.s32 1, %s1823_s23   ;;  %s30_s7 = sadd.s32 1, %s1819_s22 }
  0x11   : > { %s2222_s27 = scalar_select %p1908_p8, 1, 0 }
  0x12   : > { %p1601_p9 = pneg %p1908_p8  ;;  %s27_s8 = ssub.s32 %s1823_s23, %s1922_s6 }
  0x13   : > { %s1712_s9 = scalar_lea.vmem %s177_s29, 1024  ;;  %p1720_p5 = scmp.lt.s32.totalorder %s177_s29, %s177_s29 }
  0x14   : > { %p1917_p11 = pnand %p1601_p9, %p2216_p1  ;;  %p1713_p13 = scmp.ne.s32.totalorder %s177_s29, %s1712_s9 }
  0x15   : > { %p1721_p7 = scmp.lt.s32.totalorder %s1712_s9, %s1712_s9 }
  0x16   : > { %p1703_p12 = pneg %p1917_p11 }
  0x17   : > { %p1722_p10 = por %p1721_p7, %p1720_p5 }
  0x18   : > { %p1715_p0 = pnand %p1713_p13, %p1703_p12 }
  0x1a   : > { %p1716_p3 = pneg %p1715_p0 }
  0x1c   : > { %p1723_p2 = pnand %p1722_p10, %p1716_p3 }
  0x1e   : > { %1726 = shalt.err (!%p1723_p2)
}
  0x1f   : > { %s1826_s10 = smov 64   ;;  %s1827_s11 = smov 4  }
  0x20   : > { %1604 = dma.hbm_to_vmem [thread:$0]  (!%p1917_p11), %s2211_s1, 1024, %s177_s29, [#allocation7], %s1826_s10, %s1826_s10, %s1827_s11  }
  0x21   : > { %p28_p9 = scmp.eq.s32.totalorder %s27_s8, 0  ;;  %p37_p12 = scmp.ne.s32.totalorder %s1819_s22, %s1815_s21 }
  0x22   : > { %p38_p10 = scmp.eq.s32.totalorder %s1823_s23, 0  ;;  %p1614_p2 = scmp.lt.s32.totalorder %s1823_s23, 2 }
  0x23   : > { %s1939_s14 = scalar_select %p28_p9, %s1819_s22, %s30_s7  }
  0x24   : > { %p39_p13 = por %p38_p10, %p37_p12  ;;  %p2224_p0 = scmp.eq.s32.totalorder %s1889_s4, 1 }
  0x25   : > { %s199_s16 = sand.u32 1, %s1819_s22   ;;  %s1500_s17 = sshll.u32 %s1823_s23, 10 }
  0x26   : > { %p1943_p3 = por %p2224_p0, %p37_p12  ;;  %s1471_s18 = sshll.u32 %s199_s16, 6 }
  0x27   : > { %s1952_s28 = scalar_lea.hbm %s2210_s0, %s1500_s17  ;;  %s203_s29 = scalar_lea.vmem [#allocation3], %s1471_s18 }
  0x28   : > { %s2225_s15 = scalar_select %p1943_p3, 1, 0 }
  0x29   : > { %s210_s30 = sshll.u32 %s203_s29, 4  ;;  %p1954_p11 = pnand %p1614_p2, %p39_p13  ;;  %s1958_s30 = int_to_ptr.vmem [resolvable:$true] %s210_s30 }
  0x2a   : > { %s1960_s8 = scalar_lea.sflag [#allocation4], %s199_s16  ;;  %s1727_s9 = scalar_lea.hbm %s1952_s28, 1024 }
  0x2b   : > { %p1728_p5 = scmp.ne.s32.totalorder %s1952_s28, %s1727_s9  ;;  %p1729_p7 = pneg %p1954_p11 }
  0x2c   : > { %s1732_s12 = scalar_lea.hbm %s2210_s0, 2048  ;;  %p1733_p10 = scmp.lt.s32.totalorder %s1952_s28, %s2210_s0 }
  0x2d   : > { %p1730_p9 = pnand %p1729_p7, %p1728_p5  ;;  %p1734_p2 = scmp.lt.s32.totalorder %s1732_s12, %s1727_s9 }
  0x2f   : > { %p1731_p12 = pneg %p1730_p9  ;;  %p1735_p13 = por %p1734_p2, %p1733_p10 }
  0x31   : > { %p1736_p0 = pnand %p1735_p13, %p1731_p12 }
  0x33   : > { %1739 = shalt.err (!%p1736_p0)
}
  0x34   : > { %s1740_s16 = scalar_lea.vmem %s1958_s30, 1024  ;;  %s1828_s18 = smov [#allocation3]  }
  0x35   : > { %p1741_p1 = scmp.ne.s32.totalorder %s1958_s30, %s1740_s16  ;;  %s1745_s19 = sshll.u32 %s1828_s18, 4  ;;  %s1746_s19 = int_to_ptr.vmem [resolvable:$false] %s1745_s19 }
  0x36   : > { %s1747_s24 = scalar_lea.vmem %s1746_s19, 2048  ;;  %p1748_p9 = scmp.lt.s32.totalorder %s1958_s30, %s1746_s19 }
  0x37   : > { %p1743_p6 = pnand %p1741_p1, %p1729_p7  ;;  %p1749_p3 = scmp.lt.s32.totalorder %s1747_s24, %s1740_s16 }
  0x39   : > { %p1744_p5 = pneg %p1743_p6  ;;  %p1750_p4 = por %p1749_p3, %p1748_p9 }
  0x3b   : > { %p1751_p8 = pnand %p1750_p4, %p1744_p5 }
  0x3d   : > { %1754 = shalt.err (!%p1751_p8)
}
  0x3e   : > { %s1829_s29 = smov 128   ;;  %s1830_s9 = smov 8  }
  0x3f   : > { %1608 = dma.hbm_to_vmem [thread:$0]  (!%p1954_p11), %s1952_s28, 1024, %s1958_s30, %s1960_s8, %s1829_s29, %s1829_s29, %s1830_s9  }
  0x40   : > { %p2227_p1 = scmp.ne.s32.totalorder %s2222_s27, 0 }
  0x41   : > { %s1984_s10 = sand.u32 (!%p2227_p1), 1, %s1815_s21   ;;  %p2228_p4 = scmp.ne.s32.totalorder (!%p2227_p1), %s2220_s25, 0 }
  0x42   : > { %222 = sbr.rel (%p2227_p1) target bundleno = 1310 (0x51e), region = 40  ;;  %s1475_s11 = sshll.u32 (!%p2227_p1), %s1984_s10, 6 }
  0x43   : > { %s225_s12 = scalar_lea.sflag (!%p2227_p1), [#allocation4], %s1984_s10  ;;  %s1988_s13 = scalar_lea.vmem (!%p2227_p1), [#allocation3], %s1475_s11 }
  0x47   : > { %1798 = dma.done.wait (%p2228_p4), %s225_s12, 1024  }
  0x48   : > { %1800 = vsyncadd (%p2228_p4), %s225_s12, 4294966272  ;;  %p2229_p6 = scmp.eq.s32.totalorder %s1889_s4, 0 }
  0x4a   : > { %1802 = dma.done.wait (%p2229_p6), [#allocation7], 1024   ;;  %p2230_p8 = pmov %p2229_p6 }
  0x4b   : > { %v1659_v0 = vld [vmem:[#allocation6 + $0x38] sm:$0xff]   ;;  %v1660_v1 = vld [vmem:[#allocation6 + $0x30] sm:$0xff]   ;;  %v1661_v2 = vld [vmem:[#allocation6 + $0x28] sm:$0xff]   ;;  %s448_s7 = sld [smem:[#allocation2]]  ;;  %v466_v54 = vlaneseq  ;;  %vm500_vm0 = vcmask 1041409   ;;  %vm502_vm1 = vcmask 1042434  }
  0x4c   : > { %1804 = vsyncadd (%p2230_p8), [#allocation7], 4294966272  ;;  %1529 = vmatprep.subr.bf16.mxu0 %v1659_v0  ;;  %v1662_v3 = vld [vmem:[#allocation6 + $0x20] sm:$0xff]   ;;  %v2002_v5 = vld [vmem:[%s1988_s13 + $0x8] sm:$0xff]  ;;  %vm504_vm2 = vcmask 1043459   ;;  %vm506_vm3 = vcmask 1044484  }
  0x4d   : > { %1530 = vmatpush3.bf16.msra.mxu0 %v1659_v0  ;;  %v1999_v4 = vld [vmem:[%s1988_s13] sm:$0xff]  ;;  %v1663_v7 = vld [vmem:[#allocation6 + $0x18] sm:$0xff]   ;;  %v1664_v8 = vld [vmem:[#allocation6 + $0x10] sm:$0xff]   ;;  %v467_v56 = vand.u32 127, %v466_v54  ;;  %v2036_v57 = vshrl.u32 %v466_v54, 7  ;;  %vm508_vm4 = vcmask 1045509  }
  0x4e   : > { %1531 = vmatprep.subr.bf16.mxu0 %v1660_v1  ;;  %v269_v6 = vpack.c.bf16 %v2002_v5, %v1999_v4  ;;  %v1665_v9 = vld [vmem:[#allocation6 + $0x8] sm:$0xff]   ;;  %v1666_v10 = vld [vmem:[#allocation6] sm:$0xff]   ;;  %v2007_v11 = vld [vmem:[%s1988_s13 + $0x10] sm:$0xff]  ;;  %vm510_vm5 = vcmask 1046534   ;;  %vm512_vm6 = vcmask 1047559   ;;  %vm515_vm7 = vcmask 64512  }
  0x4f   : > { %v2010_v12 = vld [vmem:[%s1988_s13 + $0x18] sm:$0xff]  ;;  %v2013_v13 = vld [vmem:[%s1988_s13 + $0x20] sm:$0xff]  ;;  %v2016_v14 = vld [vmem:[%s1988_s13 + $0x28] sm:$0xff]  ;;  %v2039_v61 = vsub.s32 %v467_v56, %v2036_v57  ;;  %vm1833_vm8 = vmmov 0   ;;  %s1477_s8 = sshll.u32 %s1984_s10, 3  ;;  %s1497_s17 = sshll.u32 %s1889_s4, 7 }
  0x50   : > { %1545 = vmatprep.mubr.bf16.mxu0 %v269_v6  ;;  %v270_v15 = vpack.c.bf16 %v2010_v12, %v2007_v11  ;;  %v271_v16 = vpack.c.bf16 %v2016_v14, %v2013_v13  ;;  %v2023_v17 = vld [vmem:[%s1988_s13 + $0x30] sm:$0xff]  ;;  %v2026_v18 = vld [vmem:[%s1988_s13 + $0x38] sm:$0xff]  ;;  %v1478_v20 = vld [vmem:[%s2212_s2] ss:$0 sm:$0xff]  ;;  %s258_s16 = scalar_lea.vmem [#allocation8], %s1477_s8  ;;  %s2172_s29 = scalar_lea.hbm %s2215_s5, %s1497_s17 }
  0x51   : > { %1532 = vmatpush3.bf16.msra.mxu0 %v1660_v1  ;;  %v272_v19 = vpack.c.bf16 %v2026_v18, %v2023_v17  ;;  %v1487_v35 = vld [vmem:[%s2213_s3] ss:$0 sm:$0xff]  ;;  %v449_v59 = vstv %s448_s7  ;;  %s1387_s18 = sshll.u32 %s258_s16, 4  ;;  %s1374_s4 = scalar_lea.sflag [#allocation5], %s1984_s10  ;;  %s1388_s18 = int_to_ptr.vmem [resolvable:$true] %s1387_s18 }
  0x52   : > { %1533 = vmatprep.subr.bf16.mxu0 %v1661_v2  ;;  %s1755_s9 = scalar_lea.vmem %s1388_s18, 128  ;;  %p2231_p11 = scmp.ne.s32.totalorder %s2225_s15, 0 }
  0x53   : > { %p1756_p3 = scmp.ne.s32.totalorder %s1388_s18, %s1755_s9  ;;  %s1834_s11 = smov [#allocation8]  }
  0x54   : > { %s1759_s12 = sshll.u32 %s1834_s11, 4  ;;  %s1760_s12 = int_to_ptr.vmem [resolvable:$false] %s1759_s12 }
  0x55   : > { %1534 = vmatpush3.bf16.msra.mxu0 %v1661_v2  ;;  %p1757_p7 = pnand %p1756_p3, %p2231_p11  ;;  %s1761_s13 = scalar_lea.vmem %s1760_s12, 256 }
  0x56   : > { %1535 = vmatprep.subr.bf16.mxu0 %v1662_v3  ;;  %p1762_p10 = scmp.lt.s32.totalorder %s1388_s18, %s1760_s12  ;;  %p1763_p2 = scmp.lt.s32.totalorder %s1761_s13, %s1755_s9 }
  0x57   : > { %p1758_p12 = pneg %p1757_p7 }
  0x58   : > { %p1764_p13 = por %p1763_p2, %p1762_p10 }
  0x59   : > { %1536 = vmatpush3.bf16.msra.mxu0 %v1662_v3 }
  0x5a   : > { %1537 = vmatprep.subr.bf16.mxu0 %v1663_v7  ;;  %p1765_p0 = pnand %p1764_p13, %p1758_p12 }
  0x5d   : > { %1538 = vmatpush3.bf16.msra.mxu0 %v1663_v7 }
  0x5e   : > { %1539 = vmatprep.subr.bf16.mxu0 %v1664_v8 }
  0x61   : > { %1540 = vmatpush3.bf16.msra.mxu0 %v1664_v8 }
  0x62   : > { %1541 = vmatprep.subr.bf16.mxu0 %v1665_v9 }
  0x65   : > { %1542 = vmatpush3.bf16.msra.mxu0 %v1665_v9 }
  0x66   : > { %1543 = vmatprep.subr.bf16.mxu0 %v1666_v10 }
  0x69   : > { %1544 = vmatpush3.bf16.msra.mxu0 %v1666_v10 }
  0x6c   : > { %1546 = vmatmul.mubr.bf16.vlgmr.msra.gmra.mxu0 %v270_v15 }
  0x6d   : > { %1549 = vmatprep.mubr.bf16.mxu0 %v271_v16 }
  0x74   : > { %1550 = vmatmul.mubr.bf16.gmra.mxu0 %v272_v19 }
 0x12c   : > { %v1547_v21 = vpop.f32.mrf.mxu0 }
 0x12d   : > { %v387_v22 = vadd.f32 %v1547_v21, %v1478_v20 }
 0x12e   : > { %v378_v23 = vpop.f32.mrf.mxu0 }
 0x12f   : > { %1667 = vtanh.f32 %v387_v22  ;;  %v379_v24 = vadd.f32 %v1478_v20, %v378_v23 }
 0x130   : > { %v1548_v25 = vpop.f32.mrf.mxu0 }
 0x131   : > { %1669 = vtanh.f32 %v379_v24  ;;  %v390_v26 = vadd.f32 %v1548_v25, %v1478_v20 }
 0x132   : > { %v381_v27 = vpop.f32.mrf.mxu0 }
 0x133   : > { %1671 = vtanh.f32 %v390_v26  ;;  %v382_v28 = vadd.f32 %v1478_v20, %v381_v27 }
 0x134   : > { %v1551_v29 = vpop.f32.mrf.mxu0 }
 0x135   : > { %1673 = vtanh.f32 %v382_v28  ;;  %v403_v31 = vadd.f32 %v1551_v29, %v1478_v20 }
 0x136   : > { %v394_v30 = vpop.f32.mrf.mxu0 }
 0x137   : > { %v395_v32 = vadd.f32 %v1478_v20, %v394_v30 }
 0x138   : > { %v1552_v33 = vpop.f32.mrf.mxu0 }
 0x139   : > { %1675 = vtanh.f32 %v395_v32  ;;  %v406_v36 = vadd.f32 %v1552_v33, %v1478_v20 }
 0x13a   : > { %v397_v34 = vpop.f32.mrf.mxu0  ;;  %1677 = vtanh.f32 %v403_v31 }
 0x13b   : > { %v398_v37 = vadd.f32 %v1478_v20, %v397_v34 }
 0x13c   : > { %v1668_v38 = vpop.eup %1667 }
 0x13d   : > { %1679 = vtanh.f32 %v398_v37  ;;  %v426_v39 = vmul.f32 %v1668_v38, %v1487_v35  ;;  %v526_v37 = vsub.s32 1, %v2036_v57  ;;  %v530_v38 = vsub.s32 2, %v2036_v57 }
 0x13e   : > { %v1670_v40 = vpop.eup %1669  ;;  %1681 = vtanh.f32 %v406_v36  ;;  %v522_v36 = vsub.s32 0, %v2036_v57 }
 0x13f   : > { %436 = vadd.xlane.f32.xlu1 %v426_v39  ;;  %v424_v41 = vmul.f32 %v1670_v40, %v1487_v35  ;;  %v534_v39 = vsub.s32 3, %v2036_v57 }
 0x140   : > { %v1672_v42 = vpop.eup %1671 }
 0x141   : > { %432 = vadd.xlane.f32.xlu0 %v424_v41  ;;  %v427_v43 = vmul.f32 %v1672_v42, %v1487_v35 }
 0x142   : > { %v1674_v44 = vpop.eup %1673 }
 0x143   : > { %438 = vadd.xlane.f32.xlu1 %v427_v43  ;;  %v425_v45 = vmul.f32 %v1674_v44, %v1487_v35  ;;  %v538_v44 = vsub.s32 4, %v2036_v57 }
 0x145   : > { %434 = vadd.xlane.f32.xlu0 %v425_v45 }
 0x146   : > { %v1676_v46 = vpop.eup %1675 }
 0x147   : > { %v428_v47 = vmul.f32 %v1676_v46, %v1487_v35  ;;  %v1678_v48 = vpop.eup %1677 }
 0x148   : > { %v430_v51 = vmul.f32 %v1678_v48, %v1487_v35 }
 0x149   : > { %440 = vadd.xlane.f32.xlu0 %v428_v47 }
 0x14a   : > { %v1680_v49 = vpop.eup %1679 }
 0x14b   : > { %v429_v50 = vmul.f32 %v1680_v49, %v1487_v35  ;;  %v1682_v52 = vpop.eup %1681 }
 0x14c   : > { %v431_v53 = vmul.f32 %v1682_v52, %v1487_v35  ;;  %v1831_v35 = vmov 0  }
 0x14d   : > { %442 = vadd.xlane.f32.xlu1 %v429_v50  ;;  %444 = vadd.xlane.f32.xlu0 %v430_v51  ;;  %v542_v51 = vsub.s32 5, %v2036_v57 }
 0x14e   : > { %1658 = vset.pattern.permute.xlu0 %v1831_v35  ;;  %1657 = vset.pattern.permute.xlu1 %v1831_v35 }
 0x151   : > { %446 = vadd.xlane.f32.xlu1 %v431_v53 }
 0x1c8   : > { %v437_v55 = vpop.xlane.xlu1 %436 }
 0x1c9   : > { %v452_v62 = vadd.f32 %v449_v59, %v437_v55  ;;  %v546_v55 = vsub.s32 6, %v2036_v57 }
 0x1ca   : > { %v433_v58 = vpop.xlane.xlu0 %432 }
 0x1cb   : > { %v450_v60 = vadd.f32 %v449_v59, %v433_v58  ;;  %v479_v7 = vrot.slane %v452_v62, %v2039_v61 }
 0x1cc   : > { %v439_v63 = vpop.xlane.xlu1 %438 }
 0x1cd   : > { %v471_v2 = vrot.slane %v450_v60, %v2039_v61  ;;  %v453_v3 = vadd.f32 %v449_v59, %v439_v63 }
 0x1ce   : > { %v435_v0 = vpop.xlane.xlu0 %434 }
 0x1cf   : > { %v451_v1 = vadd.f32 %v449_v59, %v435_v0  ;;  %v483_v16 = vrot.slane %v453_v3, %v2039_v61 }
 0x1d1   : > { %v475_v6 = vrot.slane %v451_v1, %v2039_v61 }
 0x1d2   : > { %v441_v8 = vpop.xlane.xlu0 %440 }
 0x1d3   : > { %v501_v9 = vsel %vm500_vm0, %v475_v6, %v471_v2  ;;  %v454_v10 = vadd.f32 %v449_v59, %v441_v8 }
 0x1d4   : > { %v503_v15 = vsel %vm502_vm1, %v479_v7, %v501_v9 }
 0x1d5   : > { %v487_v19 = vrot.slane %v454_v10, %v2039_v61  ;;  %v505_v22 = vsel %vm504_vm2, %v483_v16, %v503_v15 }
 0x1d6   : > { %v443_v20 = vpop.xlane.xlu1 %442  ;;  %v445_v21 = vpop.xlane.xlu0 %444 }
 0x1d7   : > { %v455_v23 = vadd.f32 %v449_v59, %v443_v20  ;;  %v456_v24 = vadd.f32 %v449_v59, %v445_v21  ;;  %v507_v26 = vsel %vm506_vm3, %v487_v19, %v505_v22 }
 0x1d9   : > { %v491_v25 = vrot.slane %v455_v23, %v2039_v61  ;;  %v495_v27 = vrot.slane %v456_v24, %v2039_v61 }
 0x1da   : > { %v447_v28 = vpop.xlane.xlu1 %446 }
 0x1db   : > { %v457_v29 = vadd.f32 %v449_v59, %v447_v28  ;;  %v509_v30 = vsel %vm508_vm4, %v491_v25, %v507_v26 }
 0x1dc   : > { %v511_v32 = vsel %vm510_vm5, %v495_v27, %v509_v30 }
 0x1dd   : > { %v499_v31 = vrot.slane %v457_v29, %v2039_v61 }
 0x1df   : > { %v513_v33 = vsel %vm512_vm6, %v499_v31, %v511_v32 }
 0x1e0   : > { %v516_v34 = vsel %vm515_vm7, %v513_v33, -inf }
 0x1e1   : > { %517 = vmax.xlane.f32.xlu0 %v516_v34 }
 0x26a   : > { %v518_v40 = vpop.xlane.xlu0 %517 }
 0x26b   : > { %v523_v41 = vrot.slane %v518_v40, %v522_v36  ;;  %v527_v42 = vrot.slane %v518_v40, %v526_v37  ;;  %v531_v43 = vrot.slane %v518_v40, %v530_v38  ;;  %v535_v45 = vrot.slane %v518_v40, %v534_v39 }
 0x26c   : > { %v539_v52 = vrot.slane %v518_v40, %v538_v44  ;;  %v543_v56 = vrot.slane %v518_v40, %v542_v51 }
 0x26d   : > { %v560_v46 = vsub.f32 %v450_v60, %v523_v41  ;;  %v561_v47 = vsub.f32 %v451_v1, %v527_v42  ;;  %v562_v48 = vsub.f32 %v452_v62, %v531_v43  ;;  %v563_v53 = vsub.f32 %v453_v3, %v535_v45 }
 0x26e   : > { %v564_v58 = vsub.f32 %v454_v10, %v539_v52  ;;  %v550_v60 = vsub.s32 7, %v2036_v57  ;;  %v547_v62 = vrot.slane %v518_v40, %v546_v55  ;;  %v565_v63 = vsub.f32 %v455_v23, %v543_v56 }
 0x26f   : > { %v568_v49 = vmul.f32 1.442695, %v560_v46  ;;  %v570_v50 = vmul.f32 1.442695, %v561_v47  ;;  %v572_v54 = vmul.f32 1.442695, %v562_v48 }
 0x270   : > { %v574_v59 = vmul.f32 1.442695, %v563_v53  ;;  %v576_v0 = vmul.f32 1.442695, %v564_v58  ;;  %v551_v1 = vrot.slane %v518_v40, %v550_v60  ;;  %v566_v2 = vsub.f32 %v456_v24, %v547_v62 }
 0x271   : > { %1683 = vpow2.f32 %v568_v49  ;;  %v578_v3 = vmul.f32 1.442695, %v565_v63  ;;  %v1832_v53 = vmov 0.0  }
 0x272   : > { %1685 = vpow2.f32 %v570_v50  ;;  %v567_v8 = vsub.f32 %v457_v29, %v551_v1  ;;  %v580_v9 = vmul.f32 1.442695, %v566_v2  ;;  %1553 = vmatprep.subr.mxu1 %v1832_v53  ;;  %1555 = vmatprep.mubr.msk.f32.mxu1 %vm1833_vm8, %v1832_v53 }
 0x273   : > { %1687 = vpow2.f32 %v572_v54  ;;  %1554 = vmatpush3.msra.mxu1 %v1999_v4 }
 0x274   : > { %1689 = vpow2.f32 %v574_v59  ;;  %v582_v15 = vmul.f32 1.442695, %v567_v8  ;;  %1558 = vmatprep.subr.mxu1 %v1832_v53 }
 0x275   : > { %1691 = vpow2.f32 %v576_v0 }
 0x276   : > { %1693 = vpow2.f32 %v578_v3 }
 0x277   : > { %1695 = vpow2.f32 %v580_v9 }
 0x278   : > { %1697 = vpow2.f32 %v582_v15 }
 0x27e   : > { %v1684_v6 = vpop.eup %1683 }
 0x27f   : > { %v1686_v7 = vpop.eup %1685  ;;  %593 = vperm.xlu1 %1657, %v1684_v6  }
 0x280   : > { %596 = vperm.xlu0 %1658, %v1686_v7   ;;  %v1688_v10 = vpop.eup %1687 }
 0x281   : > { %v1690_v16 = vpop.eup %1689 }
 0x282   : > { %v1692_v19 = vpop.eup %1691 }
 0x283   : > { %599 = vperm.xlu1 %1657, %v1688_v10   ;;  %v1694_v20 = vpop.eup %1693 }
 0x284   : > { %v1696_v21 = vpop.eup %1695 }
 0x285   : > { %v1698_v22 = vpop.eup %1697 }
 0x287   : > { %602 = vperm.xlu1 %1657, %v1690_v16  }
 0x28b   : > { %605 = vperm.xlu1 %1657, %v1692_v19  }
 0x28f   : > { %608 = vperm.xlu1 %1657, %v1694_v20  }
 0x293   : > { %611 = vperm.xlu1 %1657, %v1696_v21  }
 0x297   : > { %614 = vperm.xlu1 %1657, %v1698_v22  }
 0x2fa   : > { %v594_v23 = vpop.permute.xlu1 %593 }
 0x2fb   : > { %v597_v27 = vpop.permute.xlu0 %596  ;;  %v619_v30 = vrot.slane %v594_v23, %v2039_v61 }
 0x2fc   : > { %v623_v29 = vrot.slane %v597_v27, %v2039_v61 }
 0x2fe   : > { %v600_v24 = vpop.permute.xlu1 %599  ;;  %v648_v35 = vsel %vm500_vm0, %v623_v29, %v619_v30 }
 0x2ff   : > { %v627_v31 = vrot.slane %v600_v24, %v2039_v61 }
 0x301   : > { %v649_v41 = vsel %vm502_vm1, %v627_v31, %v648_v35 }
 0x302   : > { %v603_v25 = vpop.permute.xlu1 %602 }
 0x303   : > { %v631_v32 = vrot.slane %v603_v25, %v2039_v61 }
 0x305   : > { %v650_v43 = vsel %vm504_vm2, %v631_v32, %v649_v41 }
 0x306   : > { %v606_v26 = vpop.permute.xlu1 %605 }
 0x307   : > { %v635_v33 = vrot.slane %v606_v26, %v2039_v61 }
 0x309   : > { %v651_v45 = vsel %vm506_vm3, %v635_v33, %v650_v43 }
 0x30a   : > { %v609_v28 = vpop.permute.xlu1 %608 }
 0x30b   : > { %v639_v40 = vrot.slane %v609_v28, %v2039_v61 }
 0x30d   : > { %v652_v47 = vsel %vm508_vm4, %v639_v40, %v651_v45 }
 0x30e   : > { %v612_v34 = vpop.permute.xlu1 %611 }
 0x30f   : > { %v643_v42 = vrot.slane %v612_v34, %v2039_v61 }
 0x311   : > { %v653_v49 = vsel %vm510_vm5, %v643_v42, %v652_v47 }
 0x312   : > { %v615_v46 = vpop.permute.xlu1 %614 }
 0x313   : > { %v647_v48 = vrot.slane %v615_v46, %v2039_v61 }
 0x315   : > { %v654_v50 = vsel %vm512_vm6, %v647_v48, %v653_v49 }
 0x316   : > { %v656_v52 = vsel %vm515_vm7, %v654_v50, 0.0 }
 0x317   : > { %657 = vadd.xlane.f32.xlu1 %v656_v52 }
 0x3a0   : > { %v658_v54 = vpop.xlane.xlu1 %657 }
 0x3a1   : > { %1699 = vrcp.f32 %v658_v54 }
 0x3ae   : > { %v1700_v56 = vpop.eup %1699 }
 0x3af   : > { %v664_v58 = vrot.slane %v1700_v56, %v522_v36  ;;  %v668_v62 = vrot.slane %v1700_v56, %v526_v37  ;;  %v672_v4 = vrot.slane %v1700_v56, %v530_v38  ;;  %v676_v1 = vrot.slane %v1700_v56, %v534_v39 }
 0x3b0   : > { %v680_v2 = vrot.slane %v1700_v56, %v538_v44  ;;  %v684_v3 = vrot.slane %v1700_v56, %v542_v51  ;;  %v688_v38 = vrot.slane %v1700_v56, %v546_v55  ;;  %v692_v39 = vrot.slane %v1700_v56, %v550_v60 }
 0x3b1   : > { %v701_v59 = vmul.f32 %v1684_v6, %v664_v58  ;;  %v702_v63 = vmul.f32 %v1686_v7, %v668_v62  ;;  %v703_v0 = vmul.f32 %v1688_v10, %v672_v4  ;;  %v704_v36 = vmul.f32 %v1690_v16, %v676_v1 }
 0x3b2   : > { %v705_v37 = vmul.f32 %v1692_v19, %v680_v2  ;;  %v706_v6 = vmul.f32 %v1694_v20, %v684_v3  ;;  %v707_v7 = vmul.f32 %v1696_v21, %v688_v38  ;;  %v708_v8 = vmul.f32 %v1698_v22, %v692_v39 }
 0x3b3   : > { %711 = vperm.xlu0 %1658, %v701_v59  }
 0x3b7   : > { %791 = vperm.xlu0 %1658, %v702_v63  }
 0x3bb   : > { %871 = vperm.xlu0 %1658, %v703_v0  }
 0x3bf   : > { %951 = vperm.xlu0 %1658, %v704_v36  }
 0x3c3   : > { %1031 = vperm.xlu0 %1658, %v705_v37  }
 0x3c7   : > { %1111 = vperm.xlu0 %1658, %v706_v6  }
 0x3cb   : > { %1191 = vperm.xlu0 %1658, %v707_v7  }
 0x3cf   : > { %1271 = vperm.xlu0 %1658, %v708_v8  }
 0x42e   : > { %v712_v9 = vpop.permute.xlu0 %711 }
 0x42f   : > { %v716_v44 = vrot.slane %v712_v9, %v2039_v61 }
 0x431   : > { %1556 = vmatmul.mubr.msk.f32.vlgmr.msra.gmra.mxu1 %vm515_vm7, %v716_v44 }
 0x432   : > { %1559 = vmatpush3.msra.mxu1 %v2002_v5  ;;  %v792_v51 = vpop.permute.xlu0 %791  ;;  %1560 = vmatprep.mubr.msk.f32.mxu1 %vm1833_vm8, %v1832_v53 }
 0x433   : > { %v796_v55 = vrot.slane %v792_v51, %v2039_v61  ;;  %1563 = vmatprep.subr.mxu1 %v1832_v53 }
 0x435   : > { %1561 = vmatmul.mubr.msk.f32.vlgmr.msra.gmra.mxu1 %vm515_vm7, %v796_v55 }
 0x436   : > { %1564 = vmatpush3.msra.mxu1 %v2007_v11  ;;  %v872_v57 = vpop.permute.xlu0 %871  ;;  %1565 = vmatprep.mubr.msk.f32.mxu1 %vm1833_vm8, %v1832_v53 }
 0x437   : > { %v876_v60 = vrot.slane %v872_v57, %v2039_v61  ;;  %1568 = vmatprep.subr.mxu1 %v1832_v53 }
 0x439   : > { %1566 = vmatmul.mubr.msk.f32.vlgmr.msra.gmra.mxu1 %vm515_vm7, %v876_v60 }
 0x43a   : > { %1569 = vmatpush3.msra.mxu1 %v2010_v12  ;;  %v952_v5 = vpop.permute.xlu0 %951  ;;  %1570 = vmatprep.mubr.msk.f32.mxu1 %vm1833_vm8, %v1832_v53 }
 0x43b   : > { %v956_v10 = vrot.slane %v952_v5, %v2039_v61  ;;  %1573 = vmatprep.subr.mxu1 %v1832_v53 }
 0x43d   : > { %1571 = vmatmul.mubr.msk.f32.vlgmr.msra.gmra.mxu1 %vm515_vm7, %v956_v10 }
 0x43e   : > { %1574 = vmatpush3.msra.mxu1 %v2013_v13  ;;  %v1032_v11 = vpop.permute.xlu0 %1031  ;;  %1575 = vmatprep.mubr.msk.f32.mxu1 %vm1833_vm8, %v1832_v53 }
 0x43f   : > { %v1036_v15 = vrot.slane %v1032_v11, %v2039_v61  ;;  %1578 = vmatprep.subr.mxu1 %v1832_v53 }
 0x441   : > { %1576 = vmatmul.mubr.msk.f32.vlgmr.msra.gmra.mxu1 %vm515_vm7, %v1036_v15 }
 0x442   : > { %1579 = vmatpush3.msra.mxu1 %v2016_v14  ;;  %v1112_v12 = vpop.permute.xlu0 %1111  ;;  %1580 = vmatprep.mubr.msk.f32.mxu1 %vm1833_vm8, %v1832_v53 }
 0x443   : > { %v1116_v16 = vrot.slane %v1112_v12, %v2039_v61  ;;  %1583 = vmatprep.subr.mxu1 %v1832_v53 }
 0x445   : > { %1581 = vmatmul.mubr.msk.f32.vlgmr.msra.gmra.mxu1 %vm515_vm7, %v1116_v16 }
 0x446   : > { %1584 = vmatpush3.msra.mxu1 %v2023_v17  ;;  %v1192_v13 = vpop.permute.xlu0 %1191  ;;  %1585 = vmatprep.mubr.msk.f32.mxu1 %vm1833_vm8, %v1832_v53 }
 0x447   : > { %v1196_v19 = vrot.slane %v1192_v13, %v2039_v61  ;;  %1588 = vmatprep.subr.mxu1 %v1832_v53 }
 0x449   : > { %1586 = vmatmul.mubr.msk.f32.vlgmr.msra.gmra.mxu1 %vm515_vm7, %v1196_v19 }
 0x44a   : > { %1589 = vmatpush3.msra.mxu1 %v2026_v18  ;;  %v1272_v14 = vpop.permute.xlu0 %1271  ;;  %1590 = vmatprep.mubr.msk.f32.mxu1 %vm1833_vm8, %v1832_v53 }
 0x44b   : > { %v1276_v20 = vrot.slane %v1272_v14, %v2039_v61 }
 0x44d   : > { %1591 = vmatmul.mubr.msk.f32.vlgmr.msra.gmra.mxu1 %vm515_vm7, %v1276_v20 }
 0x4f1   : > { %v785_v17 = vpop.f32.mrf.mxu1 }
 0x4f3   : > { %v1557_v21 = vpop.f32.mrf.mxu1 }
 0x4f5   : > { %v865_v22 = vpop.f32.mrf.mxu1 }
 0x4f6   : > { %v1357_v30 = vrot.slane %v865_v22, 7 }
 0x4f7   : > { %v1562_v23 = vpop.f32.mrf.mxu1 }
 0x4f8   : > { %v1358_v35 = vsel %vm500_vm0, %v1357_v30, %v785_v17 }
 0x4f9   : > { %v945_v24 = vpop.f32.mrf.mxu1 }
 0x4fa   : > { %v1359_v31 = vrot.slane %v945_v24, 6 }
 0x4fb   : > { %v1567_v25 = vpop.f32.mrf.mxu1 }
 0x4fc   : > { %v1360_v41 = vsel %vm502_vm1, %v1359_v31, %v1358_v35 }
 0x4fd   : > { %v1025_v26 = vpop.f32.mrf.mxu1 }
 0x4fe   : > { %v1361_v33 = vrot.slane %v1025_v26, 5 }
 0x4ff   : > { %v1572_v27 = vpop.f32.mrf.mxu1 }
 0x500   : > { %v1362_v45 = vsel %vm504_vm2, %v1361_v33, %v1360_v41 }
 0x501   : > { %v1105_v28 = vpop.f32.mrf.mxu1 }
 0x502   : > { %v1363_v61 = vrot.slane %v1105_v28, 4 }
 0x503   : > { %v1577_v18 = vpop.f32.mrf.mxu1 }
 0x504   : > { %v1364_v46 = vsel %vm506_vm3, %v1363_v61, %v1362_v45 }
 0x505   : > { %v1185_v29 = vpop.f32.mrf.mxu1 }
 0x506   : > { %v1365_v40 = vrot.slane %v1185_v29, 3 }
 0x507   : > { %v1582_v32 = vpop.f32.mrf.mxu1 }
 0x508   : > { %v1366_v48 = vsel %vm508_vm4, %v1365_v40, %v1364_v46 }
 0x509   : > { %v1265_v34 = vpop.f32.mrf.mxu1 }
 0x50a   : > { %v1367_v42 = vrot.slane %v1265_v34, 2 }
 0x50b   : > { %v1587_v43 = vpop.f32.mrf.mxu1 }
 0x50c   : > { %v1368_v50 = vsel %vm510_vm5, %v1367_v42, %v1366_v48 }
 0x50d   : > { %v1345_v47 = vpop.f32.mrf.mxu1 }
 0x50e   : > { %v1369_v49 = vrot.slane %v1345_v47, 1 }
 0x50f   : > { %v1592_v52 = vpop.f32.mrf.mxu1 }
 0x510   : > { %v1370_v53 = vsel %vm512_vm6, %v1369_v49, %v1368_v50 }
 0x511   : > { %1372 = vst [vmem:[%s258_s16] sm:$0xff] %v1370_v53 }
 0x512   : > { %1768 = shalt.err (!%p1765_p0)
}
 0x513   : > { %s1769_s25 = scalar_lea.hbm %s2172_s29, 128  ;;  %s1773_s28 = scalar_lea.hbm %s2215_s5, 256 }
 0x514   : > { %p1770_p5 = scmp.ne.s32.totalorder %s2172_s29, %s1769_s25  ;;  %p1774_p4 = scmp.lt.s32.totalorder %s2172_s29, %s2215_s5 }
 0x515   : > { %p1775_p6 = scmp.lt.s32.totalorder %s1773_s28, %s1769_s25 }
 0x516   : > { %p1771_p9 = pnand %p1770_p5, %p2231_p11 }
 0x517   : > { %p1776_p8 = por %p1775_p6, %p1774_p4 }
 0x518   : > { %p1772_p1 = pneg %p1771_p9 }
 0x51a   : > { %p1777_p3 = pnand %p1776_p8, %p1772_p1 }
 0x51c   : > { %1780 = shalt.err (!%p1777_p3)
}
 0x51d   : > { %1599 = dma.vmem_to_hbm [thread:$0]  (%p2231_p11), %s1388_s18, 128, %s2172_s29, %s1374_s4  }
 0x51e PF: > { %s1399_s8 = sand.u32 1, %s1811_s20   ;;  %p2232_p7 = scmp.ne.s32.totalorder %s2221_s26, 0 }
 0x51f   : > { %p2233_p12 = scmp.ge.s32.totalorder %s1823_s23, 2  ;;  %s1400_s17 = scalar_lea.sflag [#allocation5], %s1399_s8 }
 0x521   : > { %p1610_p10 = pnand %p2233_p12, %p2232_p7 }
 0x523   : > { %p1611_p2 = pneg %p1610_p10 }
 0x525   : > { %1806 = dma.done.wait (%p1611_p2), %s1400_s17, 128  }
 0x526   : > { %1808 = vsyncadd (%p1611_p2), %s1400_s17, 4294967168  ;;  %p20_p13 = scmp.ge.s32.totalorder %s1922_s6, 4   ;;  %s2234_s20 = smov %s1815_s21 }
 0x527   : > { %s2235_s21 = smov %s1819_s22  ;;  %s2236_s22 = smov %s1939_s14 }
 0x528   : > { %s2237_s23 = smov %s1922_s6  ;;  %22 = sbr.rel (!%p20_p13) target bundleno = 8 (0x8), region = 89 }
 0x52d   :  { %1405 = vsyncpa [#allocation4], 1 }
 0x52e   :  { %1407 = vsyncpa [#allocation4 + $0x1], 1 }
 0x52f   :  { %1408 = vsyncpa [#allocation7], 1 }
 0x530   :  { %1409 = vsyncpa [#allocation5], 1 }
 0x531   :  { %1411 = vsyncpa [#allocation5 + $0x1], 1 }

</bundles_post_ra>
